<compile_context>
chip_gen: v5e
topology: v5e:2x2
jax: 0.10.0
libtpu: 0.0.40
codegen_flags: <defaults>
</compile_context>

<pallas_src>
import functools

import jax
import jax.numpy as jnp
from jax.experimental import pallas as pl
from jax.experimental.pallas import tpu as pltpu

H = 256       # trunk hidden width
HH = 128      # per-stream hidden width
OUT_W = 128   # lane-dense output width (Q in cols 0:n_act)


def _round_up(n, m):
    return ((n + m - 1) // m) * m


def dueling_dqn_kernel(x_ref, w_ref, b_ref, q_ref, *, in_pad):
    """One batch tile of the full dueling-DQN forward.

    x_ref : (TB, in_pad)   f32/bf16  input tile (cast to bf16 in-kernel)
    w_ref : (R, 256)       bf16      packed weight slab (VMEM-resident)
    b_ref : (8, 256)       f32       packed bias slab   (VMEM-resident)
    q_ref : (TB, 128)      f32       lane-dense output; Q-values in cols 0:n_act
    """
    x = x_ref[...].astype(jnp.bfloat16)              # (TB, in_pad)

    # Static, tile-aligned views into the weight slab (in_pad is a multiple of 16).
    w1 = w_ref[0:in_pad, :]                          # (in_pad, 256)
    w2 = w_ref[in_pad:in_pad + H, :]                 # (256, 256)
    wva1 = w_ref[in_pad + H:in_pad + 2 * H, :]       # (256, 256) = [wv1 | wa1]
    whead = w_ref[in_pad + 2 * H:in_pad + 3 * H, 0:OUT_W]   # (256, 128) folded head

    b1 = b_ref[0:1, :]
    b2 = b_ref[1:2, :]
    bva1 = b_ref[2:3, :]
    bhead = b_ref[3:4, 0:OUT_W]

    # Feature trunk: Linear -> ReLU -> Linear -> ReLU   (bf16 in, f32 acc)
    h1 = jnp.dot(x, w1, preferred_element_type=jnp.float32) + b1
    h1 = jnp.maximum(h1, 0.0).astype(jnp.bfloat16)

    h2 = jnp.dot(h1, w2, preferred_element_type=jnp.float32) + b2
    feats = jnp.maximum(h2, 0.0).astype(jnp.bfloat16)

    # Fused value/advantage first layer: cols 0:128 -> v1, cols 128:256 -> a1
    hva = jnp.dot(feats, wva1, preferred_element_type=jnp.float32) + bva1
    hva = jnp.maximum(hva, 0.0).astype(jnp.bfloat16)

    # Folded dueling head: cols 0:n_act of the result ARE the Q-values
    # (value + advantage - advantage-mean already baked into whead / bhead).
    q = jnp.dot(hva, whead, preferred_element_type=jnp.float32) + bhead
    q_ref[...] = q.astype(q_ref.dtype)


def pack_params(raw, input_dim, n_act):
    """Pack the 12 raw (f32) parameters into one bf16 weight slab + one f32 bias slab.

    The dueling combine (value + adv - adv.mean) is folded into the head block so
    the kernel's last matmul directly produces Q-values in columns 0:n_act.
    """
    assert 1 <= n_act <= OUT_W, "n_act must fit the 128-wide lane-dense output"
    assert raw["wv1"].shape == (H, HH) and raw["wa1"].shape == (H, HH)
    assert raw["wv2"].shape == (HH, 1) and raw["wa2"].shape == (HH, n_act)

    in_pad = max(16, _round_up(input_dim, 16))       # bf16 sublane tile = 16
    R = in_pad + 3 * H

    w = jnp.zeros((R, H), jnp.float32)
    w = w.at[0:input_dim, :].set(raw["w1"])
    w = w.at[in_pad:in_pad + H, :].set(raw["w2"])
    # fused value/advantage layer-1: [wv1 | wa1]
    w = w.at[in_pad + H:in_pad + 2 * H, 0:HH].set(raw["wv1"])
    w = w.at[in_pad + H:in_pad + 2 * H, HH:2 * HH].set(raw["wa1"])

    # Folded dueling head (block rows: first 128 = value stream, last 128 = adv stream).
    # Column j (j < n_act):  value rows <- wv2,  adv rows <- wa2[:, j] - mean_k wa2[:, k]
    # Centering is done on the bf16-rounded weights so the numerics track a bf16 matmul
    # followed by an exact f32 mean-subtraction (the PyTorch forward, in bf16).
    wv2_q = raw["wv2"].astype(jnp.bfloat16).astype(jnp.float32)        # (128, 1)
    wa2_q = raw["wa2"].astype(jnp.bfloat16).astype(jnp.float32)        # (128, n_act)
    wa2_c = wa2_q - wa2_q.mean(axis=1, keepdims=True)
    w = w.at[in_pad + 2 * H:in_pad + 2 * H + HH, 0:n_act].set(
        jnp.broadcast_to(wv2_q, (HH, n_act)))
    w = w.at[in_pad + 2 * H + HH:in_pad + 3 * H, 0:n_act].set(wa2_c)

    b = jnp.zeros((8, H), jnp.float32)
    b = b.at[0, :].set(raw["b1"][0])
    b = b.at[1, :].set(raw["b2"][0])
    b = b.at[2, 0:HH].set(raw["bv1"][0])
    b = b.at[2, HH:2 * HH].set(raw["ba1"][0])
    ba2 = raw["ba2"][0]
    b = b.at[3, 0:n_act].set(raw["bv2"][0, 0] + ba2 - ba2.mean())

    return {
        "w": w.astype(jnp.bfloat16),
        "b": b,
        "input_dim": input_dim,
        "in_pad": in_pad,
        "n_act": n_act,
    }


def dueling_dqn_forward(x, packed):
    """x: (B, input_dim) f32; packed: output of pack_params. Returns (B, n_act) f32 Q-values."""
    input_dim = packed["input_dim"]
    in_pad = packed["in_pad"]
    n_act = packed["n_act"]
    w_packed, b_packed = packed["w"], packed["b"]
    R = w_packed.shape[0]
    B = x.shape[0]

    # Batch tiling: single step for small B; 256/512-row tiles (>= 2 grid steps,
    # so v7x's "parallel" axis shards across both TensorCores) for large B.
    if B <= 256:
        TB = max(8, _round_up(B, 8))
    else:
        TB = 256 if B <= 1024 else 512
    B_pad = _round_up(B, TB)

    if B == B_pad and input_dim == in_pad:
        x_in = x                                      # fast path: no wrapper-side ops
    else:
        x_in = jnp.zeros((B_pad, in_pad), jnp.bfloat16)
        x_in = x_in.at[:B, :input_dim].set(x.astype(jnp.bfloat16))
    in_feat = x_in.shape[1]

    kernel = functools.partial(dueling_dqn_kernel, in_pad=in_pad)

    flops = 2 * B_pad * (in_pad * H + H * H + H * H + H * OUT_W)
    bytes_accessed = (
        x_in.size * x_in.dtype.itemsize
        + w_packed.size * 2
        + b_packed.size * 4
        + B_pad * OUT_W * 4
    )

    q_pad = pl.pallas_call(
        kernel,
        out_shape=jax.ShapeDtypeStruct((B_pad, OUT_W), jnp.float32),
        grid_spec=pltpu.PrefetchScalarGridSpec(
            num_scalar_prefetch=0,
            grid=(B_pad // TB,),
            in_specs=[
                pl.BlockSpec((TB, in_feat), lambda i: (i, 0)),   # batch-tiled input
                pl.BlockSpec((R, H), lambda i: (0, 0)),          # weights: VMEM-resident
                pl.BlockSpec((8, H), lambda i: (0, 0)),          # biases: VMEM-resident
            ],
            out_specs=pl.BlockSpec((TB, OUT_W), lambda i: (i, 0)),  # lane-dense output
        ),
        compiler_params=pltpu.CompilerParams(
            dimension_semantics=("parallel",),                   # v7x: shard across 2 TCs
        ),
        cost_estimate=pl.CostEstimate(
            flops=flops, transcendentals=0, bytes_accessed=bytes_accessed
        ),
    )(x_in, w_packed, b_packed)

    return q_pad[:B, :n_act]


def init_params(key, input_dim, output_dim):
    """PyTorch-Linear-style init (uniform +/- 1/sqrt(fan_in)).

    Weights stored as (in_features, out_features); biases as (1, out_features).
    """
    dims = [
        ("w1", "b1", input_dim, 256),
        ("w2", "b2", 256, 256),
        ("wv1", "bv1", 256, 128),
        ("wv2", "bv2", 128, 1),
        ("wa1", "ba1", 256, 128),
        ("wa2", "ba2", 128, output_dim),
    ]
    params = {}
    keys = jax.random.split(key, 2 * len(dims))
    for i, (wname, bname, fan_in, fan_out) in enumerate(dims):
        bound = 1.0 / (fan_in ** 0.5)
        params[wname] = jax.random.uniform(
            keys[2 * i], (fan_in, fan_out), jnp.float32, minval=-bound, maxval=bound
        )
        params[bname] = jax.random.uniform(
            keys[2 * i + 1], (1, fan_out), jnp.float32, minval=-bound, maxval=bound
        )
    return params


def reference_forward(x, p):
    """Pure-JAX reference of the PyTorch forward pass (bf16 matmuls, f32 accumulation).

    Note: weights are quantized to bf16 (as in the kernel), so results differ from a
    pure-f32 torch forward at the ~1e-2 relative level.
    """
    bf = lambda t: t.astype(jnp.bfloat16)
    dot = lambda a, b: jnp.dot(bf(a), bf(b), preferred_element_type=jnp.float32)
    relu = lambda t: jnp.maximum(t, 0.0)

    h1 = relu(dot(x, p["w1"]) + p["b1"])
    feats = relu(dot(h1, p["w2"]) + p["b2"])
    v1 = relu(dot(feats, p["wv1"]) + p["bv1"])
    a1 = relu(dot(feats, p["wa1"]) + p["ba1"])
    value = dot(v1, p["wv2"]) + p["bv2"]
    adv = dot(a1, p["wa2"]) + p["ba2"]
    return value + (adv - adv.mean(axis=1, keepdims=True))


if __name__ == "__main__":
    key = jax.random.PRNGKey(0)
    k_params, k_x1, k_x2 = jax.random.split(key, 3)

    input_dim = 16   # observation_space.shape[0]
    output_dim = 4   # action_space.n

    raw_params = init_params(k_params, input_dim, output_dim)
    packed = pack_params(raw_params, input_dim, output_dim)

    # Small latency-bound case (fast path: no wrapper pad/cast, grid=(1,)).
    x_small = jax.random.normal(k_x1, (8, input_dim), dtype=jnp.float32)
    q_small = jax.block_until_ready(dueling_dqn_forward(x_small, packed))
    assert q_small.shape == (8, output_dim)
    assert jnp.allclose(q_small, reference_forward(x_small, raw_params),
                        atol=1e-2, rtol=1e-2), "Pallas output mismatch (small batch)"

    # Larger batch exercising the padded, multi-step (dual-TC on v7x) grid path.
    x_big = jax.random.normal(k_x2, (384, input_dim), dtype=jnp.float32)
    q_big = jax.block_until_ready(dueling_dqn_forward(x_big, packed))
    assert q_big.shape == (384, output_dim)
    assert jnp.allclose(q_big, reference_forward(x_big, raw_params),
                        atol=1e-2, rtol=1e-2), "Pallas output mismatch (large batch)"

    print("KERNEL_OK")
</pallas_src>

<mosaic_0001>
module attributes {stable_mosaic.version = 11 : i64} {
  func.func @dueling_dqn_kernel(%arg0: i32, %arg1: memref<8x16xf32, #tpu.memory_space<vmem>>, %arg2: memref<784x256xbf16, #tpu.memory_space<vmem>>, %arg3: memref<8x256xf32, #tpu.memory_space<vmem>>, %arg4: memref<8x128xf32, #tpu.memory_space<vmem>>) attributes {dimension_semantics = [#tpu.dimension_semantics<parallel>], iteration_bounds = array<i64: 1>, scalar_prefetch = 0 : i64, scratch_operands = 0 : i64, tpu.core_type = #tpu.core_type<tc>, window_params = [{transform_indices = @transform_0, window_bounds = array<i64: 8, 16>}, {pipeline_mode = #tpu.pipeline_mode<synchronous>, transform_indices = @transform_1, window_bounds = array<i64: 784, 256>}, {pipeline_mode = #tpu.pipeline_mode<synchronous>, transform_indices = @transform_2, window_bounds = array<i64: 8, 256>}, {transform_indices = @transform_3, window_bounds = array<i64: 8, 128>}]} {
    %c0 = arith.constant 0 : index
    %c0_0 = arith.constant 0 : index
    %0 = vector.load %arg1[%c0, %c0_0] : memref<8x16xf32, #tpu.memory_space<vmem>>, vector<8x16xf32>
    %1 = arith.truncf %0 : vector<8x16xf32> to vector<8x16xbf16>
    %c0_1 = arith.constant 0 : index
    %c0_2 = arith.constant 0 : index
    %2 = vector.load %arg2[%c0_1, %c0_2] : memref<784x256xbf16, #tpu.memory_space<vmem>>, vector<16x256xbf16>
    %c16 = arith.constant 16 : index
    %c0_3 = arith.constant 0 : index
    %3 = vector.load %arg2[%c16, %c0_3] : memref<784x256xbf16, #tpu.memory_space<vmem>>, vector<256x256xbf16>
    %c272 = arith.constant 272 : index
    %c0_4 = arith.constant 0 : index
    %4 = vector.load %arg2[%c272, %c0_4] : memref<784x256xbf16, #tpu.memory_space<vmem>>, vector<256x256xbf16>
    %c528 = arith.constant 528 : index
    %c0_5 = arith.constant 0 : index
    %5 = vector.load %arg2[%c528, %c0_5] : memref<784x256xbf16, #tpu.memory_space<vmem>>, vector<256x128xbf16>
    %c0_6 = arith.constant 0 : index
    %c0_7 = arith.constant 0 : index
    %6 = vector.load %arg3[%c0_6, %c0_7] : memref<8x256xf32, #tpu.memory_space<vmem>>, vector<1x256xf32>
    %c1 = arith.constant 1 : index
    %c0_8 = arith.constant 0 : index
    %7 = vector.load %arg3[%c1, %c0_8] : memref<8x256xf32, #tpu.memory_space<vmem>>, vector<1x256xf32>
    %c2 = arith.constant 2 : index
    %c0_9 = arith.constant 0 : index
    %8 = vector.load %arg3[%c2, %c0_9] : memref<8x256xf32, #tpu.memory_space<vmem>>, vector<1x256xf32>
    %c3 = arith.constant 3 : index
    %c0_10 = arith.constant 0 : index
    %9 = vector.load %arg3[%c3, %c0_10] : memref<8x256xf32, #tpu.memory_space<vmem>>, vector<1x128xf32>
    %cst = arith.constant dense<0.000000e+00> : vector<8x256xf32>
    %10 = tpu.matmul %1, %2, %cst {dimension_numbers = #tpu.dot_dimension_numbers<[1], [0], [0], [1], [0, 0, 1, 1], [], []>} : vector<8x16xbf16>, vector<16x256xbf16>, vector<8x256xf32> -> vector<8x256xf32>
    %11 = vector.broadcast %6 : vector<1x256xf32> to vector<8x256xf32>
    %12 = arith.addf %10, %11 : vector<8x256xf32>
    %cst_11 = arith.constant 0.000000e+00 : f32
    %13 = vector.broadcast %cst_11 : f32 to vector<8x256xf32>
    %14 = arith.maximumf %12, %13 : vector<8x256xf32>
    %15 = arith.truncf %14 : vector<8x256xf32> to vector<8x256xbf16>
    %cst_12 = arith.constant dense<0.000000e+00> : vector<8x256xf32>
    %16 = tpu.matmul %15, %3, %cst_12 {dimension_numbers = #tpu.dot_dimension_numbers<[1], [0], [0], [1], [0, 0, 1, 1], [], []>} : vector<8x256xbf16>, vector<256x256xbf16>, vector<8x256xf32> -> vector<8x256xf32>
    %17 = vector.broadcast %7 : vector<1x256xf32> to vector<8x256xf32>
    %18 = arith.addf %16, %17 : vector<8x256xf32>
    %cst_13 = arith.constant 0.000000e+00 : f32
    %19 = vector.broadcast %cst_13 : f32 to vector<8x256xf32>
    %20 = arith.maximumf %18, %19 : vector<8x256xf32>
    %21 = arith.truncf %20 : vector<8x256xf32> to vector<8x256xbf16>
    %cst_14 = arith.constant dense<0.000000e+00> : vector<8x256xf32>
    %22 = tpu.matmul %21, %4, %cst_14 {dimension_numbers = #tpu.dot_dimension_numbers<[1], [0], [0], [1], [0, 0, 1, 1], [], []>} : vector<8x256xbf16>, vector<256x256xbf16>, vector<8x256xf32> -> vector<8x256xf32>
    %23 = vector.broadcast %8 : vector<1x256xf32> to vector<8x256xf32>
    %24 = arith.addf %22, %23 : vector<8x256xf32>
    %cst_15 = arith.constant 0.000000e+00 : f32
    %25 = vector.broadcast %cst_15 : f32 to vector<8x256xf32>
    %26 = arith.maximumf %24, %25 : vector<8x256xf32>
    %27 = arith.truncf %26 : vector<8x256xf32> to vector<8x256xbf16>
    %cst_16 = arith.constant dense<0.000000e+00> : vector<8x128xf32>
    %28 = tpu.matmul %27, %5, %cst_16 {dimension_numbers = #tpu.dot_dimension_numbers<[1], [0], [0], [1], [0, 0, 1, 1], [], []>} : vector<8x256xbf16>, vector<256x128xbf16>, vector<8x128xf32> -> vector<8x128xf32>
    %29 = vector.broadcast %9 : vector<1x128xf32> to vector<8x128xf32>
    %30 = arith.addf %28, %29 : vector<8x128xf32>
    %c0_17 = arith.constant 0 : index
    %c0_18 = arith.constant 0 : index
    %31 = vector.load %arg4[%c0_17, %c0_18] : memref<8x128xf32, #tpu.memory_space<vmem>>, vector<8x128xf32>
    tpu.vector_store %arg4[%c0_17, %c0_18], %30 {strides = array<i32>} : memref<8x128xf32, #tpu.memory_space<vmem>>, vector<8x128xf32>,
    return
  }
  func.func @transform_0(%arg0: i32) -> (i32, i32) {
    %c0_i32 = arith.constant 0 : i32
    %c0_i32_0 = arith.constant 0 : i32
    return %arg0, %c0_i32 : i32, i32
  }
  func.func @transform_1(%arg0: i32) -> (i32, i32) {
    %c0_i32 = arith.constant 0 : i32
    %c0_i32_0 = arith.constant 0 : i32
    %c0_i32_1 = arith.constant 0 : i32
    return %c0_i32, %c0_i32_0 : i32, i32
  }
  func.func @transform_2(%arg0: i32) -> (i32, i32) {
    %c0_i32 = arith.constant 0 : i32
    %c0_i32_0 = arith.constant 0 : i32
    %c0_i32_1 = arith.constant 0 : i32
    return %c0_i32, %c0_i32_0 : i32, i32
  }
  func.func @transform_3(%arg0: i32) -> (i32, i32) {
    %c0_i32 = arith.constant 0 : i32
    %c0_i32_0 = arith.constant 0 : i32
    return %arg0, %c0_i32 : i32, i32
  }
}

</mosaic_0001>

<bundles_post_ra>
// kernel: tpu_custom_call.1
= control target key start
LH: loop header
LB: loop body
LE: loop exit
PB: predicated region body
PF: predicated region fallthrough
CT: control target
= control target key end

     0   :  { %8 = vsyncpa [#allocation3], 0  ;;  %s1357_s0 = inlined_call_operand.hbm [shape: f32[8,16], index: 0, kind: input, shape index: {}]   ;;  %s1358_s1 = inlined_call_operand.hbm [shape: bf16[784,256], index: 1, kind: input, shape index: {}]   ;;  %s1359_s2 = inlined_call_operand.hbm [shape: f32[8,256], index: 2, kind: input, shape index: {}]   ;;  %s1360_s3 = inlined_call_operand.hbm [shape: f32[8,128], index: 3, kind: output, shape index: {}]  }
   0x1   :  { %9 = vsyncpa [#allocation6], 0  ;;  %s26_s14 = sshll.u32 %s1358_s1, 4  ;;  %s27_s14 = int_to_ptr.hbm [resolvable:$true] %s26_s14 }
   0x2   :  { %10 = vsyncpa [#allocation4], 0  ;;  %s1317_s15 = smov [#allocation5]   ;;  %s16_s19 = sshll.u32 %s1357_s0, 4  ;;  %s17_s19 = int_to_ptr.hbm [resolvable:$true] %s16_s19 }
   0x3   :  { %s28_s16 = sshll.u32 %s1317_s15, 4  ;;  %s1318_s20 = smov 128   ;;  %s29_s16 = int_to_ptr.vmem [resolvable:$true] %s28_s16 }
   0x4   :  { %s1319_s21 = smov 8   ;;  %s1320_s22 = smov [#allocation2]  }
   0x5   :  { %34 = dma.hbm_to_vmem [thread:$0]  %s27_s14, 12544, %s29_s16, [#allocation6], %s1318_s20, %s1318_s20, %s1319_s21  }
   0x6   :  { %s18_s23 = sshll.u32 %s1320_s22, 4  ;;  %s40_s26 = sshll.u32 %s1359_s2, 4  ;;  %s19_s23 = int_to_ptr.vmem [resolvable:$true] %s18_s23  ;;  %s41_s26 = int_to_ptr.hbm [resolvable:$true] %s40_s26 }
   0x7   :  { %21 = dma.hbm_to_vmem [thread:$0]  %s17_s19, 128, %s19_s23, [#allocation3]  }
   0x8   :  { %s1321_s1 = smov [#allocation7]  }
   0x9   :  { %s42_s27 = sshll.u32 %s1321_s1, 4  ;;  %s43_s27 = int_to_ptr.vmem [resolvable:$true] %s42_s27 }
   0xa   :  { %45 = dma.hbm_to_vmem [thread:$0]  %s41_s26, 256, %s43_s27, [#allocation6]  }
   0xb   :  { %1311 = dma.done.wait [#allocation3], 128  }
   0xc   :  { %1312 = vsyncadd [#allocation3], 4294967168 }
   0xd   :  { %1313 = dma.done.wait [#allocation6], 12800  }
   0xe   :  { %1314 = vsyncadd [#allocation6], 4294954496  ;;  %v799_v0 = vld [vmem:[#allocation5] sm:$0xf]  ;;  %v1128_v1 = vld [vmem:[#allocation5 + $0x4] sm:$0xf0] }
   0xf   :  { %v1127_v2 = vld [vmem:[#allocation5 + $0x4] sm:$0xf]  ;;  %v800_v3 = vor.u32 %v1128_v1, %v799_v0  ;;  %v801_v4 = vld [vmem:[#allocation5 + $0x8] sm:$0xf0]  ;;  %v59_v5 = vld [vmem:[#allocation2] sm:$0xff]  ;;  %vm180_vm0 = vcmask 130048  }
  0x10   :  { %v865_v6 = vld [vmem:[#allocation5 + $0x80] sm:$0xf]  ;;  %v804_v7 = vor.u32 %v1127_v2, %v801_v4  ;;  %v60_v8 = vpack.c.bf16 %v59_v5, %v59_v5  ;;  %v1144_v9 = vld [vmem:[#allocation5 + $0x84] sm:$0xf0]  ;;  %v1143_v14 = vld [vmem:[#allocation5 + $0x84] sm:$0xf] }
  0x11   :  { %v929_v10 = vld [vmem:[#allocation5 + $0x100] sm:$0xf]  ;;  %v1160_v11 = vld [vmem:[#allocation5 + $0x104] sm:$0xf0]  ;;  %191 = vmatpush.bf16.msra.mxu0 %v800_v3  ;;  %v866_v12 = vor.u32 %v1144_v9, %v865_v6  ;;  %v867_v15 = vld [vmem:[#allocation5 + $0x88] sm:$0xf0] }
  0x12   :  { %v930_v13 = vor.u32 %v1160_v11, %v929_v10  ;;  %v1159_v16 = vld [vmem:[#allocation5 + $0x104] sm:$0xf]  ;;  %204 = vmatpush.bf16.msra.mxu1 %v804_v7  ;;  %v870_v17 = vor.u32 %v1143_v14, %v867_v15  ;;  %v931_v18 = vld [vmem:[#allocation5 + $0x108] sm:$0xf0]  ;;  %v857_v19 = vld [vmem:[#allocation5 + $0x70] sm:$0xf] }
  0x13   :  { %v1142_v20 = vld [vmem:[#allocation5 + $0x74] sm:$0xf0]  ;;  %379 = vmatpush.bf16.msra.mxu2 %v866_v12  ;;  %v934_v21 = vor.u32 %v1159_v16, %v931_v18  ;;  %v921_v23 = vld [vmem:[#allocation5 + $0xf0] sm:$0xf]  ;;  %v1141_v25 = vld [vmem:[#allocation5 + $0x74] sm:$0xf] }
  0x14   :  { %392 = vmatpush.bf16.msra.mxu3 %v930_v13  ;;  %v858_v22 = vor.u32 %v1142_v20, %v857_v19  ;;  %v1158_v24 = vld [vmem:[#allocation5 + $0xf4] sm:$0xf0]  ;;  %805 = vmatmul.msk.bf16.vlgmr.msra.gmra.mxu0 %vm180_vm0, %v60_v8  ;;  %v859_v27 = vld [vmem:[#allocation5 + $0x78] sm:$0xf0]  ;;  %v1157_v28 = vld [vmem:[#allocation5 + $0xf4] sm:$0xf] }
  0x15   :  { %v922_v26 = vor.u32 %v1158_v24, %v921_v23  ;;  %v923_v29 = vld [vmem:[#allocation5 + $0xf8] sm:$0xf0]  ;;  %806 = vmatmul.msk.bf16.vlgmr.msra.gmra.mxu1 %vm180_vm0, %v60_v8  ;;  %405 = vmatpush.bf16.msrb.mxu0 %v870_v17  ;;  %v862_v30 = vor.u32 %v1141_v25, %v859_v27  ;;  %v849_v31 = vld [vmem:[#allocation5 + $0x60] sm:$0xf]  ;;  %v1140_v32 = vld [vmem:[#allocation5 + $0x64] sm:$0xf0] }
  0x16   :  { %v913_v33 = vld [vmem:[#allocation5 + $0xe0] sm:$0xf]  ;;  %418 = vmatpush.bf16.msrb.mxu1 %v934_v21  ;;  %v926_v34 = vor.u32 %v1157_v28, %v923_v29  ;;  %v1156_v35 = vld [vmem:[#allocation5 + $0xe4] sm:$0xf0]  ;;  %v1139_v36 = vld [vmem:[#allocation5 + $0x64] sm:$0xf]  ;;  %v850_v38 = vor.u32 %v1140_v32, %v849_v31 }
  0x17   :  { %v851_v37 = vld [vmem:[#allocation5 + $0x68] sm:$0xf0]  ;;  %380 = vmatpush.bf16.msra.mxu2 %v858_v22  ;;  %v914_v39 = vor.u32 %v1156_v35, %v913_v33  ;;  %v1155_v40 = vld [vmem:[#allocation5 + $0xe4] sm:$0xf]  ;;  %v841_v42 = vld [vmem:[#allocation5 + $0x50] sm:$0xf] }
  0x18   :  { %393 = vmatpush.bf16.msra.mxu3 %v922_v26  ;;  %v915_v41 = vld [vmem:[#allocation5 + $0xe8] sm:$0xf0]  ;;  %v1138_v43 = vld [vmem:[#allocation5 + $0x54] sm:$0xf0]  ;;  %v905_v44 = vld [vmem:[#allocation5 + $0xd0] sm:$0xf]  ;;  %v854_v46 = vor.u32 %v1139_v36, %v851_v37 }
  0x19   :  { %v1154_v45 = vld [vmem:[#allocation5 + $0xd4] sm:$0xf0]  ;;  %406 = vmatpush.bf16.msrb.mxu0 %v862_v30  ;;  %v918_v47 = vor.u32 %v1155_v40, %v915_v41  ;;  %v1137_v48 = vld [vmem:[#allocation5 + $0x54] sm:$0xf]  ;;  %v843_v49 = vld [vmem:[#allocation5 + $0x58] sm:$0xf0]  ;;  %v842_v50 = vor.u32 %v1138_v43, %v841_v42 }
  0x1a   :  { %419 = vmatpush.bf16.msrb.mxu1 %v926_v34  ;;  %v906_v51 = vor.u32 %v1154_v45, %v905_v44  ;;  %v1153_v52 = vld [vmem:[#allocation5 + $0xd4] sm:$0xf]  ;;  %v907_v53 = vld [vmem:[#allocation5 + $0xd8] sm:$0xf0]  ;;  %v833_v54 = vld [vmem:[#allocation5 + $0x40] sm:$0xf]  ;;  %v846_v58 = vor.u32 %v1137_v48, %v843_v49 }
  0x1b   :  { %381 = vmatpush.bf16.msra.mxu2 %v850_v38  ;;  %v1136_v55 = vld [vmem:[#allocation5 + $0x44] sm:$0xf0]  ;;  %v897_v56 = vld [vmem:[#allocation5 + $0xc0] sm:$0xf]  ;;  %v910_v59 = vor.u32 %v1153_v52, %v907_v53  ;;  %v1135_v60 = vld [vmem:[#allocation5 + $0x44] sm:$0xf] }
  0x1c   :  { %394 = vmatpush.bf16.msra.mxu3 %v914_v39  ;;  %v1152_v57 = vld [vmem:[#allocation5 + $0xc4] sm:$0xf0]  ;;  %v835_v61 = vld [vmem:[#allocation5 + $0x48] sm:$0xf0]  ;;  %v834_v62 = vor.u32 %v1136_v55, %v833_v54  ;;  %v1151_v0 = vld [vmem:[#allocation5 + $0xc4] sm:$0xf] }
  0x1d   :  { %407 = vmatpush.bf16.msrb.mxu0 %v854_v46  ;;  %v898_v63 = vor.u32 %v1152_v57, %v897_v56  ;;  %v899_v1 = vld [vmem:[#allocation5 + $0xc8] sm:$0xf0]  ;;  %v825_v2 = vld [vmem:[#allocation5 + $0x30] sm:$0xf]  ;;  %v1134_v3 = vld [vmem:[#allocation5 + $0x34] sm:$0xf0]  ;;  %v838_v6 = vor.u32 %v1135_v60, %v835_v61 }
  0x1e   :  { %420 = vmatpush.bf16.msrb.mxu1 %v918_v47  ;;  %v889_v4 = vld [vmem:[#allocation5 + $0xb0] sm:$0xf]  ;;  %v1150_v5 = vld [vmem:[#allocation5 + $0xb4] sm:$0xf0]  ;;  %v902_v7 = vor.u32 %v1151_v0, %v899_v1  ;;  %v1133_v8 = vld [vmem:[#allocation5 + $0x34] sm:$0xf]  ;;  %v826_v10 = vor.u32 %v1134_v3, %v825_v2 }
  0x1f   :  { %382 = vmatpush.bf16.msra.mxu2 %v842_v50  ;;  %v827_v9 = vld [vmem:[#allocation5 + $0x38] sm:$0xf0]  ;;  %v890_v11 = vor.u32 %v1150_v5, %v889_v4  ;;  %v1149_v12 = vld [vmem:[#allocation5 + $0xb4] sm:$0xf]  ;;  %v817_v16 = vld [vmem:[#allocation5 + $0x20] sm:$0xf] }
  0x20   :  { %395 = vmatpush.bf16.msra.mxu3 %v906_v51  ;;  %v891_v13 = vld [vmem:[#allocation5 + $0xb8] sm:$0xf0]  ;;  %v830_v14 = vor.u32 %v1133_v8, %v827_v9  ;;  %v1132_v17 = vld [vmem:[#allocation5 + $0x24] sm:$0xf0]  ;;  %v881_v18 = vld [vmem:[#allocation5 + $0xa0] sm:$0xf] }
  0x21   :  { %408 = vmatpush.bf16.msrb.mxu0 %v846_v58  ;;  %v894_v15 = vor.u32 %v1149_v12, %v891_v13  ;;  %v818_v19 = vor.u32 %v1132_v17, %v817_v16  ;;  %v1148_v20 = vld [vmem:[#allocation5 + $0xa4] sm:$0xf0]  ;;  %v1131_v21 = vld [vmem:[#allocation5 + $0x24] sm:$0xf]  ;;  %v819_v22 = vld [vmem:[#allocation5 + $0x28] sm:$0xf0] }
  0x22   :  { %421 = vmatpush.bf16.msrb.mxu1 %v910_v59  ;;  %v882_v23 = vor.u32 %v1148_v20, %v881_v18  ;;  %v822_v24 = vor.u32 %v1131_v21, %v819_v22  ;;  %v1147_v25 = vld [vmem:[#allocation5 + $0xa4] sm:$0xf]  ;;  %v883_v26 = vld [vmem:[#allocation5 + $0xa8] sm:$0xf0]  ;;  %v809_v28 = vld [vmem:[#allocation5 + $0x10] sm:$0xf] }
  0x23   :  { %383 = vmatpush.bf16.msra.mxu2 %v834_v62  ;;  %v886_v27 = vor.u32 %v1147_v25, %v883_v26  ;;  %v1130_v29 = vld [vmem:[#allocation5 + $0x14] sm:$0xf0]  ;;  %v873_v30 = vld [vmem:[#allocation5 + $0x90] sm:$0xf]  ;;  %v1129_v33 = vld [vmem:[#allocation5 + $0x14] sm:$0xf] }
  0x24   :  { %396 = vmatpush.bf16.msra.mxu3 %v898_v63  ;;  %v810_v31 = vor.u32 %v1130_v29, %v809_v28  ;;  %v1146_v32 = vld [vmem:[#allocation5 + $0x94] sm:$0xf0]  ;;  %v811_v34 = vld [vmem:[#allocation5 + $0x18] sm:$0xf0]  ;;  %v1145_v37 = vld [vmem:[#allocation5 + $0x94] sm:$0xf] }
  0x25   :  { %409 = vmatpush.bf16.msrb.mxu0 %v838_v6  ;;  %v874_v35 = vor.u32 %v1146_v32, %v873_v30  ;;  %v814_v36 = vor.u32 %v1129_v33, %v811_v34  ;;  %v875_v38 = vld [vmem:[#allocation5 + $0x98] sm:$0xf0]  ;;  %v1057_v40 = vld [vmem:[#allocation5 + $0x200] sm:$0xf]  ;;  %v1192_v41 = vld [vmem:[#allocation5 + $0x204] sm:$0xf0] }
  0x26   :  { %422 = vmatpush.bf16.msrb.mxu1 %v902_v7  ;;  %v878_v39 = vor.u32 %v1145_v37, %v875_v38  ;;  %v1191_v42 = vld [vmem:[#allocation5 + $0x204] sm:$0xf]  ;;  %v1058_v43 = vor.u32 %v1192_v41, %v1057_v40  ;;  %v1059_v44 = vld [vmem:[#allocation5 + $0x208] sm:$0xf0]  ;;  %v1049_v45 = vld [vmem:[#allocation5 + $0x1f0] sm:$0xf] }
  0x27   :  { %384 = vmatpush.bf16.msra.mxu2 %v826_v10  ;;  %v1190_v46 = vld [vmem:[#allocation5 + $0x1f4] sm:$0xf0]  ;;  %v1062_v47 = vor.u32 %v1191_v42, %v1059_v44  ;;  %v1189_v48 = vld [vmem:[#allocation5 + $0x1f4] sm:$0xf]  ;;  %v1051_v49 = vld [vmem:[#allocation5 + $0x1f8] sm:$0xf0] }
  0x28   :  { %397 = vmatpush.bf16.msra.mxu3 %v890_v11  ;;  %v993_v50 = vld [vmem:[#allocation5 + $0x180] sm:$0xf]  ;;  %v1050_v51 = vor.u32 %v1190_v46, %v1049_v45  ;;  %v1176_v52 = vld [vmem:[#allocation5 + $0x184] sm:$0xf0]  ;;  %v1175_v53 = vld [vmem:[#allocation5 + $0x184] sm:$0xf]  ;;  %v1054_v55 = vor.u32 %v1189_v48, %v1051_v49 }
  0x29   :  { %410 = vmatpush.bf16.msrb.mxu0 %v830_v14  ;;  %v995_v54 = vld [vmem:[#allocation5 + $0x188] sm:$0xf0]  ;;  %v994_v56 = vor.u32 %v1176_v52, %v993_v50  ;;  %v1041_v58 = vld [vmem:[#allocation5 + $0x1e0] sm:$0xf]  ;;  %v1188_v59 = vld [vmem:[#allocation5 + $0x1e4] sm:$0xf0] }
  0x2a   :  { %423 = vmatpush.bf16.msrb.mxu1 %v894_v15  ;;  %v998_v57 = vor.u32 %v1175_v53, %v995_v54  ;;  %v1187_v60 = vld [vmem:[#allocation5 + $0x1e4] sm:$0xf]  ;;  %v1043_v61 = vld [vmem:[#allocation5 + $0x1e8] sm:$0xf0]  ;;  %v985_v62 = vld [vmem:[#allocation5 + $0x170] sm:$0xf]  ;;  %v1042_v3 = vor.u32 %v1188_v59, %v1041_v58 }
  0x2b   :  { %385 = vmatpush.bf16.msra.mxu2 %v818_v19  ;;  %v1174_v63 = vld [vmem:[#allocation5 + $0x174] sm:$0xf0]  ;;  %v1173_v1 = vld [vmem:[#allocation5 + $0x174] sm:$0xf]  ;;  %v987_v2 = vld [vmem:[#allocation5 + $0x178] sm:$0xf0]  ;;  %v1046_v7 = vor.u32 %v1187_v60, %v1043_v61 }
  0x2c   :  { %398 = vmatpush.bf16.msra.mxu3 %v882_v23  ;;  %v986_v0 = vor.u32 %v1174_v63, %v985_v62  ;;  %v990_v4 = vor.u32 %v1173_v1, %v987_v2  ;;  %v1033_v5 = vld [vmem:[#allocation5 + $0x1d0] sm:$0xf]  ;;  %v1186_v6 = vld [vmem:[#allocation5 + $0x1d4] sm:$0xf0]  ;;  %v977_v8 = vld [vmem:[#allocation5 + $0x160] sm:$0xf] }
  0x2d   :  { %411 = vmatpush.bf16.msrb.mxu0 %v822_v24  ;;  %v1172_v9 = vld [vmem:[#allocation5 + $0x164] sm:$0xf0]  ;;  %v1171_v10 = vld [vmem:[#allocation5 + $0x164] sm:$0xf]  ;;  %v1185_v11 = vld [vmem:[#allocation5 + $0x1d4] sm:$0xf]  ;;  %v1034_v17 = vor.u32 %v1186_v6, %v1033_v5 }
  0x2e   :  { %424 = vmatpush.bf16.msrb.mxu1 %v886_v27  ;;  %v1035_v12 = vld [vmem:[#allocation5 + $0x1d8] sm:$0xf0]  ;;  %v979_v13 = vld [vmem:[#allocation5 + $0x168] sm:$0xf0]  ;;  %v978_v14 = vor.u32 %v1172_v9, %v977_v8  ;;  %v969_v16 = vld [vmem:[#allocation5 + $0x150] sm:$0xf] }
  0x2f   :  { %386 = vmatpush.bf16.msra.mxu2 %v810_v31  ;;  %v982_v15 = vor.u32 %v1171_v10, %v979_v13  ;;  %v1170_v18 = vld [vmem:[#allocation5 + $0x154] sm:$0xf0]  ;;  %v1169_v19 = vld [vmem:[#allocation5 + $0x154] sm:$0xf]  ;;  %v971_v20 = vld [vmem:[#allocation5 + $0x158] sm:$0xf0]  ;;  %v1038_v21 = vor.u32 %v1185_v11, %v1035_v12 }
  0x30   :  { %399 = vmatpush.bf16.msra.mxu3 %v874_v35  ;;  %v1025_v22 = vld [vmem:[#allocation5 + $0x1c0] sm:$0xf]  ;;  %v1184_v23 = vld [vmem:[#allocation5 + $0x1c4] sm:$0xf0]  ;;  %v1183_v24 = vld [vmem:[#allocation5 + $0x1c4] sm:$0xf]  ;;  %v970_v26 = vor.u32 %v1170_v18, %v969_v16  ;;  %v974_v27 = vor.u32 %v1169_v19, %v971_v20 }
  0x31   :  { %412 = vmatpush.bf16.msrb.mxu0 %v814_v36  ;;  %v1027_v25 = vld [vmem:[#allocation5 + $0x1c8] sm:$0xf0]  ;;  %v159_v28 = vld [vmem:[#allocation7] ss:$8 sm:$0x3]  ;;  %v1026_v29 = vor.u32 %v1184_v23, %v1025_v22  ;;  %s1322_s0 = smov [#allocation8]  }
  0x32   :  { %425 = vmatpush.bf16.msrb.mxu1 %v878_v39  ;;  %v1030_v30 = vor.u32 %v1183_v24, %v1027_v25  ;;  %v1017_v31 = vld [vmem:[#allocation5 + $0x1b0] sm:$0xf]  ;;  %v1182_v32 = vld [vmem:[#allocation5 + $0x1b4] sm:$0xf0]  ;;  %v1181_v33 = vld [vmem:[#allocation5 + $0x1b4] sm:$0xf] }
  0x33   :  { %600 = vmatpush.bf16.msrb.mxu2 %v994_v56  ;;  %v1019_v34 = vld [vmem:[#allocation5 + $0x1b8] sm:$0xf0]  ;;  %v1018_v35 = vor.u32 %v1182_v32, %v1017_v31  ;;  %v166_v36 = vperm.slane %v159_v28, 0  ;;  %v167_v38 = vperm.slane %v159_v28, 1  ;;  %v961_v49 = vld [vmem:[#allocation5 + $0x140] sm:$0xf] }
  0x34   :  { %613 = vmatpush.bf16.msrb.mxu3 %v1058_v43  ;;  %v1022_v37 = vor.u32 %v1181_v33, %v1019_v34  ;;  %v1168_v50 = vld [vmem:[#allocation5 + $0x144] sm:$0xf0]  ;;  %v963_v53 = vld [vmem:[#allocation5 + $0x148] sm:$0xf0]  ;;  %v953_v61 = vld [vmem:[#allocation5 + $0x130] sm:$0xf] }
  0x35   :  { %626 = vmatpush.bf16.msra.mxu0 %v998_v57  ;;  %v962_v52 = vor.u32 %v1168_v50, %v961_v49  ;;  %v1180_v56 = vld [vmem:[#allocation5 + $0x1a4] sm:$0xf0]  ;;  %v1179_v57 = vld [vmem:[#allocation5 + $0x1a4] sm:$0xf]  ;;  %v1011_v59 = vld [vmem:[#allocation5 + $0x1a8] sm:$0xf0] }
  0x36   :  { %639 = vmatpush.bf16.msra.mxu1 %v1062_v47  ;;  %v1014_v60 = vor.u32 %v1179_v57, %v1011_v59  ;;  %v1166_v62 = vld [vmem:[#allocation5 + $0x134] sm:$0xf0]  ;;  %v1165_v63 = vld [vmem:[#allocation5 + $0x134] sm:$0xf]  ;;  %v955_v1 = vld [vmem:[#allocation5 + $0x138] sm:$0xf0] }
  0x37   :  { %601 = vmatpush.bf16.msrb.mxu2 %v986_v0  ;;  %v954_v0 = vor.u32 %v1166_v62, %v953_v61  ;;  %v958_v2 = vor.u32 %v1165_v63, %v955_v1  ;;  %v1177_v5 = vld [vmem:[#allocation5 + $0x194] sm:$0xf]  ;;  %v945_v9 = vld [vmem:[#allocation5 + $0x120] sm:$0xf]  ;;  %v1164_v10 = vld [vmem:[#allocation5 + $0x124] sm:$0xf0] }
  0x38   :  { %614 = vmatpush.bf16.msrb.mxu3 %v1050_v51  ;;  %v1167_v51 = vld [vmem:[#allocation5 + $0x144] sm:$0xf]  ;;  %v946_v11 = vor.u32 %v1164_v10, %v945_v9  ;;  %v947_v13 = vld [vmem:[#allocation5 + $0x128] sm:$0xf0]  ;;  %v1162_v16 = vld [vmem:[#allocation5 + $0x114] sm:$0xf0] }
  0x39   :  { %627 = vmatpush.bf16.msra.mxu0 %v990_v4  ;;  %v966_v54 = vor.u32 %v1167_v51, %v963_v53  ;;  %v1178_v4 = vld [vmem:[#allocation5 + $0x194] sm:$0xf0]  ;;  %v1163_v12 = vld [vmem:[#allocation5 + $0x124] sm:$0xf]  ;;  %v939_v19 = vld [vmem:[#allocation5 + $0x118] sm:$0xf0] }
  0x3a   :  { %640 = vmatpush.bf16.msra.mxu1 %v1054_v55  ;;  %v1009_v55 = vld [vmem:[#allocation5 + $0x1a0] sm:$0xf]  ;;  %v1208_v22 = vld [vmem:[#allocation5 + $0x304] sm:$0xf0]  ;;  %v1121_v23 = vld [vmem:[#allocation5 + $0x2f0] sm:$0xf] }
  0x3b   :  { %602 = vmatpush.bf16.msrb.mxu2 %v978_v14  ;;  %v1010_v58 = vor.u32 %v1180_v56, %v1009_v55  ;;  %v950_v14 = vor.u32 %v1163_v12, %v947_v13  ;;  %v1207_v25 = vld [vmem:[#allocation5 + $0x2f4] sm:$0xf0]  ;;  %v1117_v32 = vld [vmem:[#allocation5 + $0x2e0] sm:$0xf]  ;;  %v1206_v33 = vld [vmem:[#allocation5 + $0x2e4] sm:$0xf0] }
  0x3c   :  { %615 = vmatpush.bf16.msrb.mxu3 %v1042_v3  ;;  %v1001_v3 = vld [vmem:[#allocation5 + $0x190] sm:$0xf]  ;;  %v1199_v31 = vld [vmem:[#allocation5 + $0x274] sm:$0xf0]  ;;  %v1109_v61 = vld [vmem:[#allocation5 + $0x2c0] sm:$0xf] }
  0x3d   :  { %628 = vmatpush.bf16.msra.mxu0 %v982_v15  ;;  %v1002_v6 = vor.u32 %v1178_v4, %v1001_v3  ;;  %v937_v15 = vld [vmem:[#allocation5 + $0x110] sm:$0xf]  ;;  %v1204_v62 = vld [vmem:[#allocation5 + $0x2c4] sm:$0xf0]  ;;  %v1197_v1 = vld [vmem:[#allocation5 + $0x254] sm:$0xf0] }
  0x3e   :  { %641 = vmatpush.bf16.msra.mxu1 %v1046_v7  ;;  %v1003_v7 = vld [vmem:[#allocation5 + $0x198] sm:$0xf0]  ;;  %v938_v18 = vor.u32 %v1162_v16, %v937_v15  ;;  %v1110_v63 = vor.u32 %v1204_v62, %v1109_v61  ;;  %v1203_v4 = vld [vmem:[#allocation5 + $0x2b4] sm:$0xf0]  ;;  %v1101_v9 = vld [vmem:[#allocation5 + $0x2a0] sm:$0xf] }
  0x3f   :  { %603 = vmatpush.bf16.msrb.mxu2 %v970_v26  ;;  %v1006_v8 = vor.u32 %v1177_v5, %v1003_v7  ;;  %v1093_v26 = vld [vmem:[#allocation5 + $0x280] sm:$0xf]  ;;  %v1196_v7 = vld [vmem:[#allocation5 + $0x244] sm:$0xf0]  ;;  %v1073_v12 = vld [vmem:[#allocation5 + $0x230] sm:$0xf] }
  0x40   :  { %616 = vmatpush.bf16.msrb.mxu3 %v1034_v17  ;;  %v1161_v17 = vld [vmem:[#allocation5 + $0x114] sm:$0xf]  ;;  %v1202_v10 = vld [vmem:[#allocation5 + $0x2a4] sm:$0xf0]  ;;  %v1195_v13 = vld [vmem:[#allocation5 + $0x234] sm:$0xf0] }
  0x41   :  { %629 = vmatpush.bf16.msra.mxu0 %v974_v27  ;;  %v942_v20 = vor.u32 %v1161_v17, %v939_v19  ;;  %v1200_v27 = vld [vmem:[#allocation5 + $0x284] sm:$0xf0]  ;;  %v1097_v15 = vld [vmem:[#allocation5 + $0x290] sm:$0xf]  ;;  %v1201_v16 = vld [vmem:[#allocation5 + $0x294] sm:$0xf0] }
  0x42   :  { %642 = vmatpush.bf16.msra.mxu1 %v1038_v21  ;;  %v1125_v21 = vld [vmem:[#allocation5 + $0x300] sm:$0xf]  ;;  %v1094_v28 = vor.u32 %v1200_v27, %v1093_v26  ;;  %v1098_v17 = vor.u32 %v1201_v16, %v1097_v15  ;;  %v1194_v19 = vld [vmem:[#allocation5 + $0x224] sm:$0xf0]  ;;  %s784_s2 = sshll.u32 %s1322_s0, 4  ;;  %s786_s30 = sshll.u32 %s1360_s3, 4  ;;  %s785_s2 = int_to_ptr.vmem [resolvable:$true] %s784_s2  ;;  %s787_s30 = int_to_ptr.hbm [resolvable:$true] %s786_s30 }
  0x43   :  { %604 = vmatpush.bf16.msrb.mxu2 %v962_v52  ;;  %v1126_v24 = vor.u32 %v1208_v22, %v1125_v21  ;;  %v1065_v21 = vld [vmem:[#allocation5 + $0x210] sm:$0xf]  ;;  %v1193_v22 = vld [vmem:[#allocation5 + $0x214] sm:$0xf0] }
  0x44   :  { %617 = vmatpush.bf16.msrb.mxu3 %v1026_v29  ;;  %v1089_v29 = vld [vmem:[#allocation5 + $0x270] sm:$0xf] }
  0x45   :  { %630 = vmatpush.bf16.msra.mxu0 %v966_v54  ;;  %v1090_v34 = vor.u32 %v1199_v31, %v1089_v29 }
  0x46   :  { %643 = vmatpush.bf16.msra.mxu1 %v1030_v30  ;;  %v1122_v30 = vor.u32 %v1207_v25, %v1121_v23  ;;  %v1066_v23 = vor.u32 %v1193_v22, %v1065_v21  ;;  %v163_v25 = vld [vmem:[#allocation7 + $0x2] ss:$8 sm:$0x3] }
  0x47   :  { %605 = vmatpush.bf16.msrb.mxu2 %v954_v0  ;;  %v1081_v0 = vld [vmem:[#allocation5 + $0x250] sm:$0xf]  ;;  %v437_v26 = vperm.slane %v163_v25, 1 }
  0x48   :  { %618 = vmatpush.bf16.msrb.mxu3 %v1018_v35  ;;  %v1085_v35 = vld [vmem:[#allocation5 + $0x260] sm:$0xf]  ;;  %v1082_v3 = vor.u32 %v1197_v1, %v1081_v0 }
  0x49   :  { %631 = vmatpush.bf16.msra.mxu0 %v958_v2  ;;  %v1105_v2 = vld [vmem:[#allocation5 + $0x2b0] sm:$0xf] }
  0x4a   :  { %644 = vmatpush.bf16.msra.mxu1 %v1022_v37  ;;  %v1118_v37 = vor.u32 %v1206_v33, %v1117_v32  ;;  %v1106_v5 = vor.u32 %v1203_v4, %v1105_v2  ;;  %v436_v32 = vperm.slane %v163_v25, 0 }
  0x4b   :  { %606 = vmatpush.bf16.msrb.mxu2 %v946_v11  ;;  %v1102_v11 = vor.u32 %v1202_v10, %v1101_v9 }
  0x4c   :  { %619 = vmatpush.bf16.msrb.mxu3 %v1010_v58 }
  0x4d   :  { %632 = vmatpush.bf16.msra.mxu0 %v950_v14  ;;  %v1074_v14 = vor.u32 %v1195_v13, %v1073_v12 }
  0x4e   :  { %645 = vmatpush.bf16.msra.mxu1 %v1014_v60 }
  0x4f   :  { %607 = vmatpush.bf16.msrb.mxu2 %v938_v18  ;;  %v1069_v18 = vld [vmem:[#allocation5 + $0x220] sm:$0xf] }
  0x50   :  { %620 = vmatpush.bf16.msrb.mxu3 %v1002_v6  ;;  %v1077_v6 = vld [vmem:[#allocation5 + $0x240] sm:$0xf] }
  0x51   :  { %633 = vmatpush.bf16.msra.mxu0 %v942_v20  ;;  %v1070_v20 = vor.u32 %v1194_v19, %v1069_v18 }
  0x52   :  { %646 = vmatpush.bf16.msra.mxu1 %v1006_v8  ;;  %v1078_v8 = vor.u32 %v1196_v7, %v1077_v6 }
  0x91   :  { %v193_v39 = vpop.f32.mrf.mxu0 }
  0x92   :  { %v194_v40 = vadd.f32 %v193_v39, %v166_v36  ;;  %v206_v41 = vpop.f32.mrf.mxu1  ;;  %v1198_v36 = vld [vmem:[#allocation5 + $0x264] sm:$0xf0]  ;;  %v1205_v39 = vld [vmem:[#allocation5 + $0x2d4] sm:$0xf0] }
  0x93   :  { %v207_v42 = vadd.f32 %v206_v41, %v167_v38  ;;  %v1113_v38 = vld [vmem:[#allocation5 + $0x2d0] sm:$0xf] }
  0x94   :  { %v210_v43 = vmax.f32 %v194_v40, 0.0  ;;  %v1086_v40 = vor.u32 %v1198_v36, %v1085_v35  ;;  %v161_v41 = vld [vmem:[#allocation7 + $0x1] ss:$8 sm:$0x3] }
  0x95   :  { %v211_v44 = vmax.f32 %v207_v42, 0.0  ;;  %v1114_v42 = vor.u32 %v1205_v39, %v1113_v38 }
  0x96   :  { %v212_v45 = vpack.c.bf16 %v210_v43, %v210_v43  ;;  %v216_v43 = vperm.slane %v161_v41, 1 }
  0x97   :  { %v213_v46 = vpack.c.bf16 %v211_v44, %v211_v44 }
  0x98   :  { %387 = vmatmul.bf16.vlgmr.msra.gmra.mxu2 %v212_v45  ;;  %413 = vmatmul.bf16.vlgmr.msrb.gmra.mxu0 %v212_v45 }
  0x99   :  { %400 = vmatmul.bf16.vlgmr.msra.gmra.mxu3 %v213_v46  ;;  %426 = vmatmul.bf16.vlgmr.msrb.gmra.mxu1 %v213_v46  ;;  %v195_v47 = vpop.f32.mrf.mxu0 }
  0x9a   :  { %v208_v48 = vpop.f32.mrf.mxu1  ;;  %765 = vmatpush.bf16.msra.mxu3 %v1126_v24  ;;  %752 = vmatpush.bf16.msra.mxu2 %v1094_v28 }
  0x9b   :  { %v215_v48 = vperm.slane %v161_v41, 0 }
  0x9e   :  { %766 = vmatpush.bf16.msra.mxu3 %v1122_v30  ;;  %753 = vmatpush.bf16.msra.mxu2 %v1090_v34 }
  0xa2   :  { %767 = vmatpush.bf16.msra.mxu3 %v1118_v37  ;;  %754 = vmatpush.bf16.msra.mxu2 %v1086_v40 }
  0xa6   :  { %768 = vmatpush.bf16.msra.mxu3 %v1114_v42  ;;  %755 = vmatpush.bf16.msra.mxu2 %v1082_v3 }
  0xaa   :  { %769 = vmatpush.bf16.msra.mxu3 %v1110_v63  ;;  %756 = vmatpush.bf16.msra.mxu2 %v1078_v8 }
  0xae   :  { %770 = vmatpush.bf16.msra.mxu3 %v1106_v5  ;;  %757 = vmatpush.bf16.msra.mxu2 %v1074_v14 }
  0xb2   :  { %771 = vmatpush.bf16.msra.mxu3 %v1102_v11  ;;  %758 = vmatpush.bf16.msra.mxu2 %v1070_v20 }
  0xb6   :  { %772 = vmatpush.bf16.msra.mxu3 %v1098_v17  ;;  %759 = vmatpush.bf16.msra.mxu2 %v1066_v23 }
 0x115   :  { %v414_v44 = vpop.f32.mrf.mxu0 }
 0x116   :  { %v415_v45 = vadd.f32 %v414_v44, %v216_v43  ;;  %v427_v46 = vpop.f32.mrf.mxu1  ;;  %v164_v44 = vld [vmem:[#allocation7 + $0x3] ss:$0 sm:$0xff] }
 0x118   :  { %v428_v47 = vadd.f32 %v427_v46, %v415_v45 }
 0x11a   :  { %v432_v49 = vmax.f32 %v428_v47, 0.0 }
 0x11b   :  { %v388_v50 = vpop.f32.mrf.mxu2 }
 0x11c   :  { %v434_v51 = vpack.c.bf16 %v432_v49, %v432_v49  ;;  %v389_v52 = vadd.f32 %v388_v50, %v215_v48  ;;  %v401_v53 = vpop.f32.mrf.mxu3 }
 0x11d   :  { %v416_v54 = vpop.f32.mrf.mxu0 }
 0x11e   :  { %v402_v55 = vadd.f32 %v401_v53, %v389_v52  ;;  %v429_v56 = vpop.f32.mrf.mxu1  ;;  %621 = vmatmul.bf16.vlgmr.msrb.gmra.mxu3 %v434_v51  ;;  %647 = vmatmul.bf16.vlgmr.msra.gmra.mxu1 %v434_v51 }
 0x120   :  { %v431_v57 = vmax.f32 %v402_v55, 0.0 }
 0x122   :  { %v433_v58 = vpack.c.bf16 %v431_v57, %v431_v57 }
 0x123   :  { %v390_v59 = vpop.f32.mrf.mxu2 }
 0x124   :  { %v403_v60 = vpop.f32.mrf.mxu3  ;;  %608 = vmatmul.bf16.vlgmr.msrb.gmra.mxu2 %v433_v58  ;;  %634 = vmatmul.bf16.vlgmr.msra.gmra.mxu0 %v433_v58 }
 0x19b   :  { %v648_v24 = vpop.f32.mrf.mxu1 }
 0x1a1   :  { %v622_v27 = vpop.f32.mrf.mxu3  ;;  %v635_v28 = vpop.f32.mrf.mxu0 }
 0x1a2   :  { %v636_v29 = vadd.f32 %v635_v28, %v437_v26 }
 0x1a3   :  { %v650_v30 = vpop.f32.mrf.mxu1 }
 0x1a4   :  { %v649_v31 = vadd.f32 %v648_v24, %v636_v29 }
 0x1a6   :  { %v653_v33 = vmax.f32 %v649_v31, 0.0 }
 0x1a7   :  { %v609_v34 = vpop.f32.mrf.mxu2 }
 0x1a8   :  { %v655_v35 = vpack.c.bf16 %v653_v33, %v653_v33  ;;  %v610_v36 = vadd.f32 %v609_v34, %v436_v32 }
 0x1a9   :  { %v624_v37 = vpop.f32.mrf.mxu3  ;;  %v637_v38 = vpop.f32.mrf.mxu0 }
 0x1aa   :  { %v623_v39 = vadd.f32 %v622_v27, %v610_v36  ;;  %773 = vmatmul.bf16.vlgmr.msra.gmra.mxu3 %v655_v35 }
 0x1ac   :  { %v652_v40 = vmax.f32 %v623_v39, 0.0 }
 0x1ae   :  { %v654_v41 = vpack.c.bf16 %v652_v40, %v652_v40 }
 0x1af   :  { %v611_v42 = vpop.f32.mrf.mxu2 }
 0x1b0   :  { %760 = vmatmul.bf16.vlgmr.msra.gmra.mxu2 %v654_v41 }
 0x22d   :  { %v774_v43 = vpop.f32.mrf.mxu3 }
 0x233   :  { %v761_v45 = vpop.f32.mrf.mxu2 }
 0x234   :  { %v762_v46 = vadd.f32 %v761_v45, %v164_v44 }
 0x235   :  { %v776_v47 = vpop.f32.mrf.mxu3 }
 0x236   :  { %v775_v48 = vadd.f32 %v774_v43, %v762_v46 }
 0x238   :  { %778 = vst [vmem:[#allocation8] sm:$0xff] %v775_v48 }
 0x239   :  { %789 = dma.vmem_to_hbm [thread:$0]  %s785_s2, 128, %s787_s30, [#allocation4]  }
 0x23b   :  { %v763_v49 = vpop.f32.mrf.mxu2 }
 0x23c   :  { %1315 = dma.done.wait [#allocation4], 128  }
 0x23d   :  { %1316 = vsyncadd [#allocation4], 4294967168 }
 0x23e   :  { %794 = vsyncpa [#allocation3], 1 }
 0x23f   :  { %795 = vsyncpa [#allocation6], 1 }
 0x240   :  { %796 = vsyncpa [#allocation4], 1 }

</bundles_post_ra>
